<compile_context>
chip_gen: v7x
topology: tpu7x:2x2x1
jax: 0.10.0
libtpu: 0.0.40
codegen_flags: <defaults>
</compile_context>

<pallas_src>
import jax
import jax.numpy as jnp
from jax.experimental import pallas as pl
from jax.experimental.pallas import tpu as pltpu

EPS = 1e-5
PAD = 128          # lane width every layer is padded to
F_IN = 24          # real input features

# Rows of the packed gamma / beta / bias slab (pre-BN biases intentionally absent).
_G1, _BE1 = 0, 1
_G2, _BE2 = 2, 3
_G3, _BE3 = 4, 5
_BMU = 6
_VEC_ROWS = 8      # padded to a sublane multiple


def munet3_kernel(x_ref, w_ref, v_ref, out_ref, xpad_ref):
    """One grid step = one independent BN batch.

    x_ref   : [B, 24]        f32   this step's batch
    w_ref   : [4, 128, 128]  bf16  fc1/fc2/fc3/fc_mu weights ([in,out], zero-padded),
                                   VMEM-resident across the whole grid
    v_ref   : [8, 128]       f32   gamma/beta/b_mu rows (zero-padded), resident
    out_ref : [B, 4]         f32
    xpad_ref: [B, 128]       f32   VMEM scratch for the in-kernel zero pad of x
    """
    B = x_ref.shape[0]
    inv_b = 1.0 / B

    def row(i):
        return v_ref[i:i + 1, :]           # static slice -> [1, 128] broadcast row

    def bn_relu(q, g_row, b_row):
        # Training-mode BatchNorm1d: batch mean, biased variance, eps=1e-5.
        # sum / sum-of-squares are independent -> back-to-back XLU reductions,
        # then one EUP rsqrt.  All f32 (v5e-safe epilogue).
        s1 = jnp.sum(q, axis=0, keepdims=True)
        s2 = jnp.sum(q * q, axis=0, keepdims=True)
        mean = s1 * inv_b
        var = jnp.maximum(s2 * inv_b - mean * mean, 0.0)
        scale = jax.lax.rsqrt(var + EPS) * row(g_row)
        y = (q - mean) * scale + row(b_row)
        return jnp.maximum(y, 0.0).astype(jnp.bfloat16)   # bf16 for the next MXU dot

    # In-kernel zero pad 24 -> 128 lanes (re-zeroed every step: safe under
    # "parallel" core sharding; one vreg store, negligible).
    xpad_ref[...] = jnp.zeros_like(xpad_ref)
    xpad_ref[:, :F_IN] = x_ref[...]
    x = xpad_ref[...].astype(jnp.bfloat16)

    # Pre-BN linear biases dropped: they cancel exactly under training-mode BN.
    h = bn_relu(jnp.dot(x, w_ref[0], preferred_element_type=jnp.float32), _G1, _BE1)
    h = bn_relu(jnp.dot(h, w_ref[1], preferred_element_type=jnp.float32), _G2, _BE2)
    h = bn_relu(jnp.dot(h, w_ref[2], preferred_element_type=jnp.float32), _G3, _BE3)
    mu = jnp.tanh(
        jnp.dot(h, w_ref[3], preferred_element_type=jnp.float32) + row(_BMU))

    # Emit only the 4 real action dims (single small masked store).
    out_ref[...] = mu[:, :4].astype(out_ref.dtype)


def munet3_forward(x_steps, w_slab, v_slab):
    """x_steps: [T, B, 24] -- T independent BN batches (e.g. env/rollout steps).

    Returns [T, B, 4].  Params are DMA'd once and stay VMEM-resident across the
    grid; x/out are pipelined per step.
    """
    T, B, F = x_steps.shape
    return pl.pallas_call(
        munet3_kernel,
        out_shape=jax.ShapeDtypeStruct((T, B, 4), jnp.float32),
        grid_spec=pltpu.PrefetchScalarGridSpec(
            num_scalar_prefetch=0,
            grid=(T,),
            in_specs=[
                pl.BlockSpec((None, B, F), lambda t: (t, 0, 0)),    # per-step x
                pl.BlockSpec((4, PAD, PAD), lambda t: (0, 0, 0)),   # resident weights
                pl.BlockSpec((_VEC_ROWS, PAD), lambda t: (0, 0)),   # resident vectors
            ],
            out_specs=pl.BlockSpec((None, B, 4), lambda t: (t, 0, 0)),
            scratch_shapes=[pltpu.VMEM((B, PAD), jnp.float32)],
        ),
        compiler_params=pltpu.CompilerParams(
            dimension_semantics=("parallel",)),   # independent steps -> v7x 2-TC split
    )(x_steps, w_slab, v_slab)


def init_params(key):
    """PyTorch-equivalent init: Linear U(-1/sqrt(fan_in), +), BN gamma=1, beta=0."""
    ks = jax.random.split(key, 4)

    def lin(k, fi, fo):
        kw, kb = jax.random.split(k)
        bound = 1.0 / jnp.sqrt(fi)
        w = jax.random.uniform(kw, (fi, fo), jnp.float32, -bound, bound)  # [in, out]
        b = jax.random.uniform(kb, (fo,), jnp.float32, -bound, bound)
        return w, b

    w1, b1 = lin(ks[0], 24, 128)   # fc1
    w2, b2 = lin(ks[1], 128, 64)   # fc2
    w3, b3 = lin(ks[2], 64, 32)    # fc3
    wm, bm = lin(ks[3], 32, 4)     # fc_mu

    def bn(n):
        return jnp.ones((n,), jnp.float32), jnp.zeros((n,), jnp.float32)

    g1, be1 = bn(128)
    g2, be2 = bn(64)
    g3, be3 = bn(32)
    return dict(w1=w1, b1=b1, g1=g1, be1=be1,
                w2=w2, b2=b2, g2=g2, be2=be2,
                w3=w3, b3=b3, g3=g3, be3=be3,
                wm=wm, bm=bm)


def pack_params(p):
    """Pack the parameters the kernel needs into 2 DMA-friendly slabs.

    Padding contract (keeps padded features exactly 0 in-kernel): weight
    rows/cols and gamma/beta/bias lanes beyond the real extents are ZERO.
    Pre-BN biases b1/b2/b3 are NOT packed (they cancel under training-mode BN).
    """
    def pad_w(w):
        fi, fo = w.shape
        return jnp.zeros((PAD, PAD), jnp.float32).at[:fi, :fo].set(w)

    w_slab = jnp.stack(
        [pad_w(p["w1"]), pad_w(p["w2"]), pad_w(p["w3"]), pad_w(p["wm"])]
    ).astype(jnp.bfloat16)                                   # [4, 128, 128] bf16

    def pad_v(v):
        return jnp.zeros((PAD,), jnp.float32).at[:v.shape[0]].set(v)

    rows = [p["g1"], p["be1"],
            p["g2"], p["be2"],
            p["g3"], p["be3"],
            p["bm"]]
    v_slab = jnp.stack([pad_v(r) for r in rows])             # [7, 128]
    v_slab = jnp.pad(v_slab, ((0, _VEC_ROWS - v_slab.shape[0]), (0, 0)))
    return w_slab, v_slab


def munet3_reference(x, p, *, bf16_dots=False):
    """Pure-JAX reference for ONE batch, mirroring PyTorch training-mode BN
    (includes the pre-BN biases exactly as the nn.Module does)."""
    def dot(h, w):
        if bf16_dots:
            return jnp.dot(h.astype(jnp.bfloat16), w.astype(jnp.bfloat16),
                           preferred_element_type=jnp.float32)
        return jnp.dot(h, w, preferred_element_type=jnp.float32)

    def bn_relu(q, g, b):
        mean = jnp.mean(q, axis=0, keepdims=True)
        var = jnp.mean((q - mean) ** 2, axis=0, keepdims=True)
        return jnp.maximum((q - mean) * jax.lax.rsqrt(var + EPS) * g + b, 0.0)

    h = bn_relu(dot(x, p["w1"]) + p["b1"], p["g1"], p["be1"])
    h = bn_relu(dot(h, p["w2"]) + p["b2"], p["g2"], p["be2"])
    h = bn_relu(dot(h, p["w3"]) + p["b3"], p["g3"], p["be3"])
    return jnp.tanh(dot(h, p["wm"]) + p["bm"])


if __name__ == "__main__":
    key = jax.random.PRNGKey(0)
    kx, kp = jax.random.split(key)

    T, B = 4, 8  # T independent BN batches; B >= 2 for training-mode BN, 8 = one sublane
    x = jax.random.normal(kx, (T, B, F_IN), jnp.float32)
    params = init_params(kp)
    w_slab, v_slab = pack_params(params)

    out = munet3_forward(x, w_slab, v_slab)
    jax.block_until_ready(out)
    assert out.shape == (T, B, 4)

    # Tight check vs. a reference mirroring the kernel's bf16 MXU numerics
    # (reference keeps the pre-BN biases; they cancel mathematically).
    ref_bf16 = jax.vmap(lambda xs: munet3_reference(xs, params, bf16_dots=True))(x)
    assert jnp.allclose(out, ref_bf16, atol=1e-3, rtol=1e-3), (
        float(jnp.max(jnp.abs(out - ref_bf16))))

    # Loose check vs. the full-f32 PyTorch-semantics reference.
    ref_f32 = jax.vmap(lambda xs: munet3_reference(xs, params, bf16_dots=False))(x)
    assert jnp.allclose(out, ref_f32, atol=5e-2, rtol=5e-2), (
        float(jnp.max(jnp.abs(out - ref_f32))))

    print("KERNEL_OK")
</pallas_src>

<mosaic_0001>
module attributes {stable_mosaic.version = 11 : i64} {
  func.func @munet3_kernel(%arg0: i32, %arg1: memref<1x8x24xf32, #tpu.memory_space<vmem>>, %arg2: memref<4x128x128xbf16, #tpu.memory_space<vmem>>, %arg3: memref<8x128xf32, #tpu.memory_space<vmem>>, %arg4: memref<1x8x4xf32, #tpu.memory_space<vmem>>, %arg5: memref<8x128xf32, #tpu.memory_space<vmem>>) attributes {dimension_semantics = [#tpu.dimension_semantics<parallel>], iteration_bounds = array<i64: 4>, scalar_prefetch = 0 : i64, scratch_operands = 1 : i64, tpu.core_type = #tpu.core_type<tc>, window_params = [{transform_indices = @transform_0, window_bounds = array<i64: 1, 8, 24>}, {pipeline_mode = #tpu.pipeline_mode<synchronous>, transform_indices = @transform_1, window_bounds = array<i64: 4, 128, 128>}, {pipeline_mode = #tpu.pipeline_mode<synchronous>, transform_indices = @transform_2, window_bounds = array<i64: 8, 128>}, {transform_indices = @transform_3, window_bounds = array<i64: 1, 8, 4>}]} {
    %cst = arith.constant 0.000000e+00 : f32
    %0 = vector.broadcast %cst : f32 to vector<8x128xf32>
    %c0 = arith.constant 0 : index
    %c0_0 = arith.constant 0 : index
    %1 = vector.load %arg5[%c0, %c0_0] : memref<8x128xf32, #tpu.memory_space<vmem>>, vector<8x128xf32>
    tpu.vector_store %arg5[%c0, %c0_0], %0 {strides = array<i32>} : memref<8x128xf32, #tpu.memory_space<vmem>>, vector<8x128xf32>,
    %c0_1 = arith.constant 0 : index
    %c0_2 = arith.constant 0 : index
    %c0_3 = arith.constant 0 : index
    %2 = vector.load %arg1[%c0_1, %c0_2, %c0_3] : memref<1x8x24xf32, #tpu.memory_space<vmem>>, vector<1x8x24xf32>
    %3 = vector.shape_cast %2 : vector<1x8x24xf32> to vector<8x24xf32>
    %c0_4 = arith.constant 0 : index
    %c0_5 = arith.constant 0 : index
    %4 = vector.load %arg5[%c0_4, %c0_5] : memref<8x128xf32, #tpu.memory_space<vmem>>, vector<8x24xf32>
    tpu.vector_store %arg5[%c0_4, %c0_5], %3 {strides = array<i32>} : memref<8x128xf32, #tpu.memory_space<vmem>>, vector<8x24xf32>,
    %c0_6 = arith.constant 0 : index
    %c0_7 = arith.constant 0 : index
    %5 = vector.load %arg5[%c0_6, %c0_7] : memref<8x128xf32, #tpu.memory_space<vmem>>, vector<8x128xf32>
    %6 = arith.truncf %5 : vector<8x128xf32> to vector<8x128xbf16>
    %c0_8 = arith.constant 0 : index
    %c0_9 = arith.constant 0 : index
    %c0_10 = arith.constant 0 : index
    %7 = vector.load %arg2[%c0_8, %c0_9, %c0_10] : memref<4x128x128xbf16, #tpu.memory_space<vmem>>, vector<1x128x128xbf16>
    %8 = vector.shape_cast %7 : vector<1x128x128xbf16> to vector<128x128xbf16>
    %cst_11 = arith.constant dense<0.000000e+00> : vector<8x128xf32>
    %9 = tpu.matmul %6, %8, %cst_11 {dimension_numbers = #tpu.dot_dimension_numbers<[1], [0], [0], [1], [0, 0, 1, 1], [], []>} : vector<8x128xbf16>, vector<128x128xbf16>, vector<8x128xf32> -> vector<8x128xf32>
    %cst_12 = arith.constant dense<0.000000e+00> : vector<128xf32>
    %10 = vector.multi_reduction <add>, %9, %cst_12 [0] : vector<8x128xf32> to vector<128xf32>
    %11 = vector.shape_cast %10 : vector<128xf32> to vector<1x128xf32>
    %12 = arith.mulf %9, %9 : vector<8x128xf32>
    %cst_13 = arith.constant dense<0.000000e+00> : vector<128xf32>
    %13 = vector.multi_reduction <add>, %12, %cst_13 [0] : vector<8x128xf32> to vector<128xf32>
    %14 = vector.shape_cast %13 : vector<128xf32> to vector<1x128xf32>
    %cst_14 = arith.constant 1.250000e-01 : f32
    %15 = vector.broadcast %cst_14 : f32 to vector<1x128xf32>
    %16 = arith.mulf %11, %15 : vector<1x128xf32>
    %cst_15 = arith.constant 1.250000e-01 : f32
    %17 = vector.broadcast %cst_15 : f32 to vector<1x128xf32>
    %18 = arith.mulf %14, %17 : vector<1x128xf32>
    %19 = arith.mulf %16, %16 : vector<1x128xf32>
    %20 = arith.subf %18, %19 : vector<1x128xf32>
    %cst_16 = arith.constant 0.000000e+00 : f32
    %21 = vector.broadcast %cst_16 : f32 to vector<1x128xf32>
    %22 = arith.maximumf %20, %21 : vector<1x128xf32>
    %cst_17 = arith.constant 9.99999974E-6 : f32
    %23 = vector.broadcast %cst_17 : f32 to vector<1x128xf32>
    %24 = arith.addf %22, %23 : vector<1x128xf32>
    %25 = math.rsqrt %24 : vector<1x128xf32>
    %c0_18 = arith.constant 0 : index
    %c0_19 = arith.constant 0 : index
    %26 = vector.load %arg3[%c0_18, %c0_19] : memref<8x128xf32, #tpu.memory_space<vmem>>, vector<1x128xf32>
    %27 = arith.mulf %25, %26 : vector<1x128xf32>
    %28 = vector.broadcast %16 : vector<1x128xf32> to vector<8x128xf32>
    %29 = arith.subf %9, %28 : vector<8x128xf32>
    %30 = vector.broadcast %27 : vector<1x128xf32> to vector<8x128xf32>
    %31 = arith.mulf %29, %30 : vector<8x128xf32>
    %c1 = arith.constant 1 : index
    %c0_20 = arith.constant 0 : index
    %32 = vector.load %arg3[%c1, %c0_20] : memref<8x128xf32, #tpu.memory_space<vmem>>, vector<1x128xf32>
    %33 = vector.broadcast %32 : vector<1x128xf32> to vector<8x128xf32>
    %34 = arith.addf %31, %33 : vector<8x128xf32>
    %cst_21 = arith.constant 0.000000e+00 : f32
    %35 = vector.broadcast %cst_21 : f32 to vector<8x128xf32>
    %36 = arith.maximumf %34, %35 : vector<8x128xf32>
    %37 = arith.truncf %36 : vector<8x128xf32> to vector<8x128xbf16>
    %c1_22 = arith.constant 1 : index
    %c0_23 = arith.constant 0 : index
    %c0_24 = arith.constant 0 : index
    %38 = vector.load %arg2[%c1_22, %c0_23, %c0_24] : memref<4x128x128xbf16, #tpu.memory_space<vmem>>, vector<1x128x128xbf16>
    %39 = vector.shape_cast %38 : vector<1x128x128xbf16> to vector<128x128xbf16>
    %cst_25 = arith.constant dense<0.000000e+00> : vector<8x128xf32>
    %40 = tpu.matmul %37, %39, %cst_25 {dimension_numbers = #tpu.dot_dimension_numbers<[1], [0], [0], [1], [0, 0, 1, 1], [], []>} : vector<8x128xbf16>, vector<128x128xbf16>, vector<8x128xf32> -> vector<8x128xf32>
    %cst_26 = arith.constant dense<0.000000e+00> : vector<128xf32>
    %41 = vector.multi_reduction <add>, %40, %cst_26 [0] : vector<8x128xf32> to vector<128xf32>
    %42 = vector.shape_cast %41 : vector<128xf32> to vector<1x128xf32>
    %43 = arith.mulf %40, %40 : vector<8x128xf32>
    %cst_27 = arith.constant dense<0.000000e+00> : vector<128xf32>
    %44 = vector.multi_reduction <add>, %43, %cst_27 [0] : vector<8x128xf32> to vector<128xf32>
    %45 = vector.shape_cast %44 : vector<128xf32> to vector<1x128xf32>
    %cst_28 = arith.constant 1.250000e-01 : f32
    %46 = vector.broadcast %cst_28 : f32 to vector<1x128xf32>
    %47 = arith.mulf %42, %46 : vector<1x128xf32>
    %cst_29 = arith.constant 1.250000e-01 : f32
    %48 = vector.broadcast %cst_29 : f32 to vector<1x128xf32>
    %49 = arith.mulf %45, %48 : vector<1x128xf32>
    %50 = arith.mulf %47, %47 : vector<1x128xf32>
    %51 = arith.subf %49, %50 : vector<1x128xf32>
    %cst_30 = arith.constant 0.000000e+00 : f32
    %52 = vector.broadcast %cst_30 : f32 to vector<1x128xf32>
    %53 = arith.maximumf %51, %52 : vector<1x128xf32>
    %cst_31 = arith.constant 9.99999974E-6 : f32
    %54 = vector.broadcast %cst_31 : f32 to vector<1x128xf32>
    %55 = arith.addf %53, %54 : vector<1x128xf32>
    %56 = math.rsqrt %55 : vector<1x128xf32>
    %c2 = arith.constant 2 : index
    %c0_32 = arith.constant 0 : index
    %57 = vector.load %arg3[%c2, %c0_32] : memref<8x128xf32, #tpu.memory_space<vmem>>, vector<1x128xf32>
    %58 = arith.mulf %56, %57 : vector<1x128xf32>
    %59 = vector.broadcast %47 : vector<1x128xf32> to vector<8x128xf32>
    %60 = arith.subf %40, %59 : vector<8x128xf32>
    %61 = vector.broadcast %58 : vector<1x128xf32> to vector<8x128xf32>
    %62 = arith.mulf %60, %61 : vector<8x128xf32>
    %c3 = arith.constant 3 : index
    %c0_33 = arith.constant 0 : index
    %63 = vector.load %arg3[%c3, %c0_33] : memref<8x128xf32, #tpu.memory_space<vmem>>, vector<1x128xf32>
    %64 = vector.broadcast %63 : vector<1x128xf32> to vector<8x128xf32>
    %65 = arith.addf %62, %64 : vector<8x128xf32>
    %cst_34 = arith.constant 0.000000e+00 : f32
    %66 = vector.broadcast %cst_34 : f32 to vector<8x128xf32>
    %67 = arith.maximumf %65, %66 : vector<8x128xf32>
    %68 = arith.truncf %67 : vector<8x128xf32> to vector<8x128xbf16>
    %c2_35 = arith.constant 2 : index
    %c0_36 = arith.constant 0 : index
    %c0_37 = arith.constant 0 : index
    %69 = vector.load %arg2[%c2_35, %c0_36, %c0_37] : memref<4x128x128xbf16, #tpu.memory_space<vmem>>, vector<1x128x128xbf16>
    %70 = vector.shape_cast %69 : vector<1x128x128xbf16> to vector<128x128xbf16>
    %cst_38 = arith.constant dense<0.000000e+00> : vector<8x128xf32>
    %71 = tpu.matmul %68, %70, %cst_38 {dimension_numbers = #tpu.dot_dimension_numbers<[1], [0], [0], [1], [0, 0, 1, 1], [], []>} : vector<8x128xbf16>, vector<128x128xbf16>, vector<8x128xf32> -> vector<8x128xf32>
    %cst_39 = arith.constant dense<0.000000e+00> : vector<128xf32>
    %72 = vector.multi_reduction <add>, %71, %cst_39 [0] : vector<8x128xf32> to vector<128xf32>
    %73 = vector.shape_cast %72 : vector<128xf32> to vector<1x128xf32>
    %74 = arith.mulf %71, %71 : vector<8x128xf32>
    %cst_40 = arith.constant dense<0.000000e+00> : vector<128xf32>
    %75 = vector.multi_reduction <add>, %74, %cst_40 [0] : vector<8x128xf32> to vector<128xf32>
    %76 = vector.shape_cast %75 : vector<128xf32> to vector<1x128xf32>
    %cst_41 = arith.constant 1.250000e-01 : f32
    %77 = vector.broadcast %cst_41 : f32 to vector<1x128xf32>
    %78 = arith.mulf %73, %77 : vector<1x128xf32>
    %cst_42 = arith.constant 1.250000e-01 : f32
    %79 = vector.broadcast %cst_42 : f32 to vector<1x128xf32>
    %80 = arith.mulf %76, %79 : vector<1x128xf32>
    %81 = arith.mulf %78, %78 : vector<1x128xf32>
    %82 = arith.subf %80, %81 : vector<1x128xf32>
    %cst_43 = arith.constant 0.000000e+00 : f32
    %83 = vector.broadcast %cst_43 : f32 to vector<1x128xf32>
    %84 = arith.maximumf %82, %83 : vector<1x128xf32>
    %cst_44 = arith.constant 9.99999974E-6 : f32
    %85 = vector.broadcast %cst_44 : f32 to vector<1x128xf32>
    %86 = arith.addf %84, %85 : vector<1x128xf32>
    %87 = math.rsqrt %86 : vector<1x128xf32>
    %c4 = arith.constant 4 : index
    %c0_45 = arith.constant 0 : index
    %88 = vector.load %arg3[%c4, %c0_45] : memref<8x128xf32, #tpu.memory_space<vmem>>, vector<1x128xf32>
    %89 = arith.mulf %87, %88 : vector<1x128xf32>
    %90 = vector.broadcast %78 : vector<1x128xf32> to vector<8x128xf32>
    %91 = arith.subf %71, %90 : vector<8x128xf32>
    %92 = vector.broadcast %89 : vector<1x128xf32> to vector<8x128xf32>
    %93 = arith.mulf %91, %92 : vector<8x128xf32>
    %c5 = arith.constant 5 : index
    %c0_46 = arith.constant 0 : index
    %94 = vector.load %arg3[%c5, %c0_46] : memref<8x128xf32, #tpu.memory_space<vmem>>, vector<1x128xf32>
    %95 = vector.broadcast %94 : vector<1x128xf32> to vector<8x128xf32>
    %96 = arith.addf %93, %95 : vector<8x128xf32>
    %cst_47 = arith.constant 0.000000e+00 : f32
    %97 = vector.broadcast %cst_47 : f32 to vector<8x128xf32>
    %98 = arith.maximumf %96, %97 : vector<8x128xf32>
    %99 = arith.truncf %98 : vector<8x128xf32> to vector<8x128xbf16>
    %c3_48 = arith.constant 3 : index
    %c0_49 = arith.constant 0 : index
    %c0_50 = arith.constant 0 : index
    %100 = vector.load %arg2[%c3_48, %c0_49, %c0_50] : memref<4x128x128xbf16, #tpu.memory_space<vmem>>, vector<1x128x128xbf16>
    %101 = vector.shape_cast %100 : vector<1x128x128xbf16> to vector<128x128xbf16>
    %cst_51 = arith.constant dense<0.000000e+00> : vector<8x128xf32>
    %102 = tpu.matmul %99, %101, %cst_51 {dimension_numbers = #tpu.dot_dimension_numbers<[1], [0], [0], [1], [0, 0, 1, 1], [], []>} : vector<8x128xbf16>, vector<128x128xbf16>, vector<8x128xf32> -> vector<8x128xf32>
    %c6 = arith.constant 6 : index
    %c0_52 = arith.constant 0 : index
    %103 = vector.load %arg3[%c6, %c0_52] : memref<8x128xf32, #tpu.memory_space<vmem>>, vector<1x128xf32>
    %104 = vector.broadcast %103 : vector<1x128xf32> to vector<8x128xf32>
    %105 = arith.addf %102, %104 : vector<8x128xf32>
    %106 = math.tanh %105 : vector<8x128xf32>
    %107 = vector.extract_strided_slice %106 {offsets = [0, 0], sizes = [8, 4], strides = [1, 1]} : vector<8x128xf32> to vector<8x4xf32>
    %c0_53 = arith.constant 0 : index
    %c0_54 = arith.constant 0 : index
    %c0_55 = arith.constant 0 : index
    %108 = vector.load %arg4[%c0_53, %c0_54, %c0_55] : memref<1x8x4xf32, #tpu.memory_space<vmem>>, vector<1x8x4xf32>
    %109 = vector.shape_cast %108 : vector<1x8x4xf32> to vector<8x4xf32>
    %110 = vector.shape_cast %107 : vector<8x4xf32> to vector<1x8x4xf32>
    tpu.vector_store %arg4[%c0_53, %c0_54, %c0_55], %110 {strides = array<i32>} : memref<1x8x4xf32, #tpu.memory_space<vmem>>, vector<1x8x4xf32>,
    return
  }
  func.func @transform_0(%arg0: i32) -> (i32, i32, i32) {
    %c0_i32 = arith.constant 0 : i32
    %c0_i32_0 = arith.constant 0 : i32
    %c0_i32_1 = arith.constant 0 : i32
    return %arg0, %c0_i32, %c0_i32_0 : i32, i32, i32
  }
  func.func @transform_1(%arg0: i32) -> (i32, i32, i32) {
    %c0_i32 = arith.constant 0 : i32
    %c0_i32_0 = arith.constant 0 : i32
    %c0_i32_1 = arith.constant 0 : i32
    %c0_i32_2 = arith.constant 0 : i32
    return %c0_i32, %c0_i32_0, %c0_i32_1 : i32, i32, i32
  }
  func.func @transform_2(%arg0: i32) -> (i32, i32) {
    %c0_i32 = arith.constant 0 : i32
    %c0_i32_0 = arith.constant 0 : i32
    %c0_i32_1 = arith.constant 0 : i32
    return %c0_i32, %c0_i32_0 : i32, i32
  }
  func.func @transform_3(%arg0: i32) -> (i32, i32, i32) {
    %c0_i32 = arith.constant 0 : i32
    %c0_i32_0 = arith.constant 0 : i32
    %c0_i32_1 = arith.constant 0 : i32
    return %arg0, %c0_i32, %c0_i32_0 : i32, i32, i32
  }
}

</mosaic_0001>

<bundles_post_ra>
// kernel: tpu_custom_call.1
= control target key start
LH: loop header
LB: loop body
LE: loop exit
PB: predicated region body
PF: predicated region fallthrough
CT: control target
= control target key end

     0   :  { %8 = vsyncpa [#allocation4], 0  ;;  %s1480_s0 = inlined_call_operand.hbm [shape: f32[4,8,24], index: 0, kind: input, shape index: {}]   ;;  %s1481_s1 = inlined_call_operand.hbm [shape: bf16[4,128,128], index: 1, kind: input, shape index: {}]   ;;  %s1482_s2 = inlined_call_operand.hbm [shape: f32[8,128], index: 2, kind: input, shape index: {}]   ;;  %s1483_s3 = inlined_call_operand.vmem [shape: f32[4,8,4], index: 3, kind: output, shape index: {}]  }
   0x1   :  { %10 = vsyncpa [#allocation4 + $0x1], 0 }
   0x2   :  { %11 = vsyncpa [#allocation6], 0  ;;  %s1262_s12 = smov 0   ;;  %s1264_s13 = smov 0  }
   0x3   :  { %s1266_s14 = smov 0   ;;  %s1268_s15 = smov 0  }
   0x4 LB: > { %s1281_s16 = sadd.s32 4294967295, %s1233_s15   ;;  %p37_p0 = scmp.ne.s32.totalorder %s1225_s13, %s1221_s12  ;;  %s1233_s15 = sphi %s1268_s15, %s1498_s15   ;;  %s1229_s14 = sphi %s1266_s14, %s1497_s14   ;;  %s1225_s13 = sphi %s1264_s13, %s1496_s13   ;;  %s1221_s12 = sphi %s1262_s12, %s1495_s12  }
   0x5   : > { %p1484_p1 = scmp.eq.s32.totalorder %s1281_s16, 0  ;;  %p840_p2 = scmp.ge.s32.totalorder %s1233_s15, 1 }
   0x6   : > { %p116_p3 = scmp.lt.s32.totalorder %s1233_s15, 5  ;;  %s1235_s19 = smov [#allocation5]  }
   0x7   : > { %p1289_p4 = por %p1484_p1, %p37_p0  ;;  %s128_s20 = sshll.u32 %s1235_s19, 4  ;;  %s129_s20 = int_to_ptr.vmem [resolvable:$true] %s128_s20 }
   0x8   : > { %p1293_p5 = pnand %p840_p2, %p116_p3  ;;  %s1236_s22 = smov [#allocation7]  }
   0x9   : > { %s1487_s17 = scalar_select %p1289_p4, 1, 0 }
   0xa   : > { %s1488_s18 = scalar_select %p1293_p5, 1, 0 }
   0xb   : > { %p1015_p6 = pneg %p1293_p5  ;;  %s142_s23 = sshll.u32 %s1236_s22, 4  ;;  %s1305_s23 = int_to_ptr.vmem [resolvable:$true] %s142_s23 }
   0xc   : > { %s1109_s26 = scalar_lea.hbm %s1481_s1, 4096 }
   0xd   : > { %p1301_p7 = pnand %p1015_p6, %p1484_p1  ;;  %p1110_p8 = scmp.ne.s32.totalorder %s1481_s1, %s1109_s26 }
   0xe   : > { %p1116_p12 = scmp.lt.u32.totalorder %s1109_s26, %s1481_s1 }
   0xf   : > { %p1111_p9 = pneg %p1301_p7 }
  0x11   : > { %p1112_p10 = pnand %p1111_p9, %p1110_p8 }
  0x13   : > { %p1113_p11 = pneg %p1112_p10 }
  0x15   : > { %p1118_p13 = pnand %p1116_p12, %p1113_p11 }
  0x17   : > { %1121 = shalt.err (!%p1118_p13)
}
  0x18   : > { %s1122_s4 = scalar_lea.vmem %s129_s20, 4096  ;;  %p1130_p6 = scmp.lt.s32.totalorder %s129_s20, %s129_s20 }
  0x19   : > { %p1123_p0 = scmp.ne.s32.totalorder %s129_s20, %s1122_s4  ;;  %p1131_p1 = scmp.lt.s32.totalorder %s1122_s4, %s1122_s4 }
  0x1b   : > { %p1125_p2 = pnand %p1123_p0, %p1111_p9  ;;  %p1132_p4 = por %p1131_p1, %p1130_p6 }
  0x1d   : > { %p1126_p3 = pneg %p1125_p2 }
  0x1f   : > { %p1133_p5 = pnand %p1132_p4, %p1126_p3 }
  0x21   : > { %1136 = shalt.err (!%p1133_p5)
}
  0x22   : > { %s1237_s5 = smov 64   ;;  %s1238_s6 = smov 4  }
  0x23   : > { %1018 = dma.hbm_to_vmem [thread:$0]  (!%p1301_p7), %s1481_s1, 4096, %s129_s20, [#allocation6], %s1237_s5, %s1237_s5, %s1238_s6  }
  0x24   : > { %s1137_s11 = scalar_lea.hbm %s1482_s2, 128 }
  0x25   : > { %p1138_p8 = scmp.ne.s32.totalorder %s1482_s2, %s1137_s11  ;;  %p1144_p5 = scmp.lt.u32.totalorder %s1137_s11, %s1482_s2 }
  0x27   : > { %p1140_p1 = pnand %p1138_p8, %p1111_p9 }
  0x29   : > { %p1141_p4 = pneg %p1140_p1 }
  0x2b   : > { %p1146_p10 = pnand %p1144_p5, %p1141_p4 }
  0x2d   : > { %1149 = shalt.err (!%p1146_p10)
}
  0x2e   : > { %s1150_s20 = scalar_lea.vmem %s1305_s23, 128  ;;  %p1158_p0 = scmp.lt.s32.totalorder %s1305_s23, %s1305_s23 }
  0x2f   : > { %p1151_p11 = scmp.ne.s32.totalorder %s1305_s23, %s1150_s20  ;;  %p1159_p2 = scmp.lt.s32.totalorder %s1150_s20, %s1150_s20 }
  0x31   : > { %p1153_p12 = pnand %p1151_p11, %p1111_p9  ;;  %p1160_p3 = por %p1159_p2, %p1158_p0 }
  0x33   : > { %p1154_p13 = pneg %p1153_p12 }
  0x35   : > { %p1161_p6 = pnand %p1160_p3, %p1154_p13 }
  0x37   : > { %1164 = shalt.err (!%p1161_p6)
}
  0x38   : > { %1021 = dma.hbm_to_vmem [thread:$0]  (!%p1301_p7), %s1482_s2, 128, %s1305_s23, [#allocation6]  }
  0x39   : > { %s1355_s27 = sadd.s32 1, %s1233_s15   ;;  %s24_s28 = sadd.s32 1, %s1229_s14 }
  0x3a   : > { %s21_s21 = ssub.s32 %s1233_s15, %s1355_s27  ;;  %p31_p9 = scmp.ne.s32.totalorder %s1229_s14, %s1225_s13 }
  0x3b   : > { %p22_p8 = scmp.eq.s32.totalorder %s21_s21, 0  ;;  %p32_p1 = scmp.eq.s32.totalorder %s1233_s15, 0 }
  0x3c   : > { %p1028_p4 = scmp.lt.s32.totalorder %s1233_s15, 4  ;;  %s153_s29 = sand.u32 1, %s1229_s14  }
  0x3d   : > { %s1366_s30 = scalar_select %p22_p8, %s1229_s14, %s24_s28  }
  0x3e   : > { %p33_p5 = por %p32_p1, %p31_p9  ;;  %s844_s4 = sshll.u32 %s153_s29, 3 }
  0x3f   : > { %s845_s5 = sshll.u32 %s1233_s15, 7  ;;  %s157_s23 = scalar_lea.vmem [#allocation3], %s844_s4 }
  0x40   : > { %s1372_s8 = scalar_lea.hbm %s1480_s0, %s845_s5  ;;  %s164_s9 = sshll.u32 %s157_s23, 4  ;;  %s1378_s9 = int_to_ptr.vmem [resolvable:$true] %s164_s9 }
  0x41   : > { %p1374_p7 = pnand %p1028_p4, %p33_p5  ;;  %s154_s15 = scalar_lea.sflag [#allocation4], %s153_s29 }
  0x42   : > { %s1165_s11 = scalar_lea.hbm %s1372_s8, 128  ;;  %s1170_s22 = scalar_lea.hbm %s1480_s0, 512 }
  0x43   : > { %p1166_p10 = scmp.ne.s32.totalorder %s1372_s8, %s1165_s11  ;;  %p1167_p11 = pneg %p1374_p7 }
  0x44   : > { %p1171_p0 = scmp.lt.u32.totalorder %s1372_s8, %s1480_s0  ;;  %p1172_p2 = scmp.lt.u32.totalorder %s1170_s22, %s1165_s11 }
  0x45   : > { %p1168_p12 = pnand %p1167_p11, %p1166_p10  ;;  %p1174_p6 = scmp.lt.u32.totalorder %s1165_s11, %s1372_s8 }
  0x46   : > { %p1173_p3 = por %p1172_p2, %p1171_p0 }
  0x47   : > { %p1169_p13 = pneg %p1168_p12 }
  0x48   : > { %p1175_p9 = por %p1174_p6, %p1173_p3 }
  0x4a   : > { %p1176_p8 = pnand %p1175_p9, %p1169_p13 }
  0x4c   : > { %1179 = shalt.err (!%p1176_p8)
}
  0x4d   : > { %s1180_s25 = scalar_lea.vmem %s1378_s9, 128  ;;  %s1239_s26 = smov [#allocation3]  }
  0x4e   : > { %p1181_p1 = scmp.ne.s32.totalorder %s1378_s9, %s1180_s25  ;;  %s1185_s28 = sshll.u32 %s1239_s26, 4  ;;  %s1186_s28 = int_to_ptr.vmem [resolvable:$false] %s1185_s28 }
  0x4f   : > { %s1187_s21 = scalar_lea.vmem %s1186_s28, 256  ;;  %p1188_p10 = scmp.lt.s32.totalorder %s1378_s9, %s1186_s28 }
  0x50   : > { %p1183_p4 = pnand %p1181_p1, %p1167_p11  ;;  %p1189_p12 = scmp.lt.s32.totalorder %s1187_s21, %s1180_s25 }
  0x52   : > { %p1184_p5 = pneg %p1183_p4  ;;  %p1190_p0 = por %p1189_p12, %p1188_p10 }
  0x54   : > { %p1191_p2 = pnand %p1190_p0, %p1184_p5 }
  0x56   : > { %1194 = shalt.err (!%p1191_p2)
}
  0x57   : > { %1025 = dma.hbm_to_vmem [thread:$0]  (!%p1374_p7), %s1372_s8, 128, %s1378_s9, %s154_s15  }
  0x58   : > { %p1491_p13 = scmp.ne.s32.totalorder %s1488_s18, 0 }
  0x59   : > { %s175_s29 = sand.u32 (!%p1491_p13), 1, %s1225_s13   ;;  %p1492_p11 = scmp.ne.s32.totalorder (!%p1491_p13), %s1487_s17, 0 }
  0x5a   : > { %173 = sbr.rel (%p1491_p13) target bundleno = 1132 (0x46c), region = 32  ;;  %s847_s4 = sshll.u32 (!%p1491_p13), %s175_s29, 3 }
  0x5b   : > { %s176_s5 = scalar_lea.sflag (!%p1491_p13), [#allocation4], %s175_s29  ;;  %s179_s6 = scalar_lea.vmem (!%p1491_p13), [#allocation3], %s847_s4 }
  0x61   : > { %1212 = dma.done.wait (%p1492_p11), %s176_s5, 128  }
  0x62   : > { %1214 = vsyncadd (%p1492_p11), %s176_s5, 4294967168  ;;  %p1493_p3 = scmp.eq.s32.totalorder %s1281_s16, 0 }
  0x64   : > { %1216 = dma.done.wait (%p1493_p3), [#allocation6], 4224   ;;  %p1494_p6 = pmov %p1493_p3 }
  0x65   : > { %v1240_v0 = vmov 0.0   ;;  %vm1241_vm0 = vmmov 0   ;;  %v1069_v1 = vld [vmem:[#allocation5] sm:$0xff]   ;;  %v1070_v2 = vld [vmem:[#allocation5 + $0x8] sm:$0xff]   ;;  %v1071_v3 = vld [vmem:[#allocation5 + $0x10] sm:$0xff]   ;;  %vm216_vm1 = vcmask 195584   ;;  %v347_v43 = vlaneseq }
  0x66   : > { %1218 = vsyncadd (%p1494_p6), [#allocation6], 4294963072  ;;  %925 = vmatprep.subr.bf16.mxu0 %v1240_v0  ;;  %214 = vst [vmem:[#allocation2] sm:$0xff] %v1240_v0  ;;  %941 = vmatprep.mubr.msk.bf16.mxu0 %vm1241_vm0, %v1240_v0  ;;  %v1072_v4 = vld [vmem:[#allocation5 + $0x18] sm:$0xff]   ;;  %v1073_v6 = vld [vmem:[#allocation5 + $0x20] sm:$0xff]   ;;  %p209_p7 = scmp.lt.s32.totalorder %s1281_s16, 3 }
  0x67   : > { %945 = vmatprep.subr.bf16.mxu1 %v1240_v0  ;;  %961 = vmatprep.mubr.msk.bf16.mxu1 %vm1241_vm0, %v1240_v0  ;;  %v215_v5 = vld [vmem:[%s179_s6] sm:$0xff]  ;;  %v1074_v7 = vld [vmem:[#allocation5 + $0x28] sm:$0xff]   ;;  %v1077_v12 = vld [vmem:[#allocation5 + $0x40] sm:$0xff]   ;;  %v348_v44 = vshrl.u32 %v347_v43, 7  ;;  %vm753_vm2 = vcmask 31744  }
  0x68   : > { %926 = vmatpush3.bf16.msra.mxu0 %v1069_v1  ;;  %217 = vst.msk [vmem:[#allocation2] sm:$0xff] %vm216_vm1, %v215_v5  ;;  %v1075_v8 = vld [vmem:[#allocation5 + $0x30] sm:$0xff]   ;;  %v1076_v9 = vld [vmem:[#allocation5 + $0x38] sm:$0xff]   ;;  %946 = vmatpush3.bf16.msra.mxu1 %v1077_v12  ;;  %v1078_v13 = vld [vmem:[#allocation5 + $0x48] sm:$0xff]   ;;  %s1500_s16 = smov (!%p209_p7, %s1281_s16), 3 }
  0x69   : > { %927 = vmatprep.subr.bf16.mxu0 %v1240_v0  ;;  %947 = vmatprep.subr.bf16.mxu1 %v1240_v0  ;;  %v1079_v14 = vld [vmem:[#allocation5 + $0x50] sm:$0xff]   ;;  %v1080_v15 = vld [vmem:[#allocation5 + $0x58] sm:$0xff]   ;;  %v1081_v16 = vld [vmem:[#allocation5 + $0x60] sm:$0xff]   ;;  %v1441_v46 = vsub.s32 0, %v348_v44  ;;  %s850_s17 = sshll.u32 %s1500_s16, 3 }
  0x6a   : > { %v1082_v17 = vld [vmem:[#allocation5 + $0x68] sm:$0xff]   ;;  %v1083_v18 = vld [vmem:[#allocation5 + $0x70] sm:$0xff]   ;;  %v1084_v19 = vld [vmem:[#allocation5 + $0x78] sm:$0xff]   ;;  %s212_s8 = scalar_lea.vmem %s1483_s3, %s850_s17 }
  0x6b   : > { %v344_v45 = vld [vmem:[#allocation7] sm:$0x1]  ;;  %v859_v51 = vld [vmem:[#allocation7 + $0x1] ss:$0 sm:$0xff]  ;;  %v1086_v57 = vld [vmem:[#allocation5 + $0x88] sm:$0xff]  }
  0x6c   : > { %928 = vmatpush3.bf16.msra.mxu0 %v1070_v2  ;;  %948 = vmatpush3.bf16.msra.mxu1 %v1078_v13  ;;  %v1085_v56 = vld [vmem:[#allocation5 + $0x80] sm:$0xff]   ;;  %v1087_v58 = vld [vmem:[#allocation5 + $0x90] sm:$0xff]   ;;  %v1088_v59 = vld [vmem:[#allocation5 + $0x98] sm:$0xff]  }
  0x6d   : > { %929 = vmatprep.subr.bf16.mxu0 %v1240_v0  ;;  %949 = vmatprep.subr.bf16.mxu1 %v1240_v0  ;;  %v1089_v60 = vld [vmem:[#allocation5 + $0xa0] sm:$0xff]   ;;  %v1090_v61 = vld [vmem:[#allocation5 + $0xa8] sm:$0xff]   ;;  %v1091_v62 = vld [vmem:[#allocation5 + $0xb0] sm:$0xff]  }
  0x6e   : > { %v1092_v63 = vld [vmem:[#allocation5 + $0xb8] sm:$0xff]  }
  0x6f   : > { %v218_v10 = vld [vmem:[#allocation2] sm:$0xff] }
  0x70   : > { %930 = vmatpush3.bf16.msra.mxu0 %v1071_v3  ;;  %v219_v11 = vpack.c.bf16 %v218_v10, %v218_v10  ;;  %950 = vmatpush3.bf16.msra.mxu1 %v1079_v14 }
  0x71   : > { %931 = vmatprep.subr.bf16.mxu0 %v1240_v0  ;;  %951 = vmatprep.subr.bf16.mxu1 %v1240_v0 }
  0x74   : > { %932 = vmatpush3.bf16.msra.mxu0 %v1072_v4  ;;  %952 = vmatpush3.bf16.msra.mxu1 %v1080_v15 }
  0x75   : > { %933 = vmatprep.subr.bf16.mxu0 %v1240_v0  ;;  %953 = vmatprep.subr.bf16.mxu1 %v1240_v0 }
  0x78   : > { %934 = vmatpush3.bf16.msra.mxu0 %v1073_v6  ;;  %954 = vmatpush3.bf16.msra.mxu1 %v1081_v16 }
  0x79   : > { %935 = vmatprep.subr.bf16.mxu0 %v1240_v0  ;;  %955 = vmatprep.subr.bf16.mxu1 %v1240_v0 }
  0x7c   : > { %936 = vmatpush3.bf16.msra.mxu0 %v1074_v7  ;;  %956 = vmatpush3.bf16.msra.mxu1 %v1082_v17 }
  0x7d   : > { %937 = vmatprep.subr.bf16.mxu0 %v1240_v0  ;;  %957 = vmatprep.subr.bf16.mxu1 %v1240_v0 }
  0x80   : > { %938 = vmatpush3.bf16.msra.mxu0 %v1075_v8  ;;  %958 = vmatpush3.bf16.msra.mxu1 %v1083_v18 }
  0x81   : > { %939 = vmatprep.subr.bf16.mxu0 %v1240_v0  ;;  %959 = vmatprep.subr.bf16.mxu1 %v1240_v0 }
  0x84   : > { %940 = vmatpush3.bf16.msra.mxu0 %v1076_v9  ;;  %960 = vmatpush3.bf16.msra.mxu1 %v1084_v19 }
  0x85   : > { %965 = vmatprep.subr.bf16.mxu0 %v1240_v0  ;;  %985 = vmatprep.subr.bf16.mxu1 %v1240_v0 }
  0x87   : > { %942 = vmatmul.mubr.bf16.vlgmr.msra.gmra.mrb[0].mxu0 %v219_v11 }
  0x88   : > { %981 = vmatprep.mubr.msk.bf16.mxu0 %vm1241_vm0, %v1240_v0  ;;  %966 = vmatpush3.bf16.msra.mxu0 %v1085_v56 }
  0x89   : > { %967 = vmatprep.subr.bf16.mxu0 %v1240_v0 }
  0x8c   : > { %968 = vmatpush3.bf16.msra.mxu0 %v1086_v57 }
  0x8d   : > { %969 = vmatprep.subr.bf16.mxu0 %v1240_v0 }
  0x90   : > { %970 = vmatpush3.bf16.msra.mxu0 %v1087_v58 }
  0x91   : > { %971 = vmatprep.subr.bf16.mxu0 %v1240_v0 }
  0x94   : > { %972 = vmatpush3.bf16.msra.mxu0 %v1088_v59 }
  0x95   : > { %973 = vmatprep.subr.bf16.mxu0 %v1240_v0 }
  0x98   : > { %974 = vmatpush3.bf16.msra.mxu0 %v1089_v60 }
  0x99   : > { %975 = vmatprep.subr.bf16.mxu0 %v1240_v0 }
  0x9c   : > { %976 = vmatpush3.bf16.msra.mxu0 %v1090_v61 }
  0x9d   : > { %977 = vmatprep.subr.bf16.mxu0 %v1240_v0 }
  0xa0   : > { %978 = vmatpush3.bf16.msra.mxu0 %v1091_v62 }
  0xa1   : > { %979 = vmatprep.subr.bf16.mxu0 %v1240_v0 }
  0xa4   : > { %980 = vmatpush3.bf16.msra.mxu0 %v1092_v63 }
 0x15a   : > { %v318_v20 = vpop.f32.mrb[0].mxu0 }
 0x15b   : > { %v324_v21 = vrot.slane %v318_v20, 4  ;;  %v330_v22 = vmul.f32 %v318_v20, %v318_v20  ;;  %v943_v23 = vpop.f32.mrb[1].mxu0 }
 0x15c   : > { %v321_v24 = vpop.f32.mrb[2].mxu0 }
 0x15d   : > { %v325_v25 = vadd.f32 %v324_v21, %v318_v20  ;;  %v331_v26 = vrot.slane %v330_v22, 4  ;;  %v944_v27 = vpop.f32.mrb[3].mxu0  ;;  %v485_v24 = vld [vmem:[#allocation7 + $0x2] sm:$0x1] }
 0x15f   : > { %v326_v28 = vrot.slane %v325_v25, 2  ;;  %v332_v29 = vadd.f32 %v331_v26, %v330_v22 }
 0x161   : > { %v327_v30 = vadd.f32 %v326_v28, %v325_v25  ;;  %v333_v31 = vrot.slane %v332_v29, 2 }
 0x163   : > { %v328_v32 = vrot.slane %v327_v30, 1  ;;  %v334_v33 = vadd.f32 %v333_v31, %v332_v29  ;;  %v868_v29 = vld [vmem:[#allocation7 + $0x3] ss:$0 sm:$0xff] }
 0x165   : > { %v329_v34 = vadd.f32 %v328_v32, %v327_v30  ;;  %v335_v35 = vrot.slane %v334_v33, 1 }
 0x167   : > { %v336_v36 = vadd.f32 %v335_v35, %v334_v33  ;;  %v337_v37 = vmul.f32 0.125, %v329_v34  ;;  %v1093_v34 = vld [vmem:[#allocation5 + $0xc0] sm:$0xff]   ;;  %v1094_v35 = vld [vmem:[#allocation5 + $0xc8] sm:$0xff]  }
 0x169   : > { %v338_v38 = vmul.f32 0.125, %v336_v36  ;;  %v339_v39 = vmul.f32 %v337_v37, %v337_v37  ;;  %v346_v49 = vsub.f32 %v318_v20, %v337_v37  ;;  %v1095_v36 = vld [vmem:[#allocation5 + $0xd0] sm:$0xff]   ;;  %v1096_v37 = vld [vmem:[#allocation5 + $0xd8] sm:$0xff]  }
 0x16b   : > { %v340_v40 = vsub.f32 %v338_v38, %v339_v39  ;;  %v1097_v38 = vld [vmem:[#allocation5 + $0xe0] sm:$0xff]   ;;  %v1098_v39 = vld [vmem:[#allocation5 + $0xe8] sm:$0xff]  }
 0x16d   : > { %v341_v41 = vmax.f32 %v340_v40, 0.0  ;;  %v1099_v40 = vld [vmem:[#allocation5 + $0xf0] sm:$0xff]  }
 0x16f   : > { %v342_v42 = vadd.f32 1e-05, %v341_v41  ;;  %v1100_v41 = vld [vmem:[#allocation5 + $0xf8] sm:$0xff]  }
 0x171   : > { %1101 = vrsqrt.f32 %v342_v42 }
 0x17b   : > { %v1102_v47 = vpop.eup %1101 }
 0x17c   : > { %v345_v48 = vmul.f32 %v1102_v47, %v344_v45 }
 0x17e   : > { %v350_v50 = vrot.slane %v345_v48, %v1441_v46 }
 0x180   : > { %v351_v52 = vmul.f32 %v350_v50, %v346_v49 }
 0x182   : > { %v357_v53 = vadd.f32 %v859_v51, %v351_v52 }
 0x184   : > { %v358_v54 = vmax.f32 %v357_v53, 0.0 }
 0x186   : > { %v359_v55 = vpack.c.bf16 %v358_v54, %v358_v54 }
 0x188   : > { %962 = vmatmul.mubr.bf16.vlgmr.msra.gmra.mrb[0].mxu1 %v359_v55 }
 0x189   : > { %1001 = vmatprep.mubr.msk.bf16.mxu1 %vm1241_vm0, %v1240_v0  ;;  %986 = vmatpush3.bf16.msra.mxu1 %v1093_v34 }
 0x18a   : > { %987 = vmatprep.subr.bf16.mxu1 %v1240_v0 }
 0x18d   : > { %988 = vmatpush3.bf16.msra.mxu1 %v1094_v35 }
 0x18e   : > { %989 = vmatprep.subr.bf16.mxu1 %v1240_v0 }
 0x191   : > { %990 = vmatpush3.bf16.msra.mxu1 %v1095_v36 }
 0x192   : > { %991 = vmatprep.subr.bf16.mxu1 %v1240_v0 }
 0x195   : > { %992 = vmatpush3.bf16.msra.mxu1 %v1096_v37 }
 0x196   : > { %993 = vmatprep.subr.bf16.mxu1 %v1240_v0 }
 0x199   : > { %994 = vmatpush3.bf16.msra.mxu1 %v1097_v38 }
 0x19a   : > { %995 = vmatprep.subr.bf16.mxu1 %v1240_v0 }
 0x19d   : > { %996 = vmatpush3.bf16.msra.mxu1 %v1098_v39 }
 0x19e   : > { %997 = vmatprep.subr.bf16.mxu1 %v1240_v0 }
 0x1a1   : > { %998 = vmatpush3.bf16.msra.mxu1 %v1099_v40 }
 0x1a2   : > { %999 = vmatprep.subr.bf16.mxu1 %v1240_v0 }
 0x1a5   : > { %1000 = vmatpush3.bf16.msra.mxu1 %v1100_v41 }
 0x25b   : > { %v459_v1 = vpop.f32.mrb[0].mxu1 }
 0x25c   : > { %v465_v2 = vrot.slane %v459_v1, 4  ;;  %v471_v3 = vmul.f32 %v459_v1, %v459_v1  ;;  %v963_v4 = vpop.f32.mrb[1].mxu1 }
 0x25d   : > { %v462_v5 = vpop.f32.mrb[2].mxu1 }
 0x25e   : > { %v466_v6 = vadd.f32 %v465_v2, %v459_v1  ;;  %v472_v7 = vrot.slane %v471_v3, 4  ;;  %v964_v8 = vpop.f32.mrb[3].mxu1  ;;  %v626_v2 = vld [vmem:[#allocation7 + $0x4] sm:$0x1] }
 0x260   : > { %v467_v9 = vrot.slane %v466_v6, 2  ;;  %v473_v10 = vadd.f32 %v472_v7, %v471_v3  ;;  %v877_v7 = vld [vmem:[#allocation7 + $0x5] ss:$0 sm:$0xff] }
 0x262   : > { %v468_v11 = vadd.f32 %v467_v9, %v466_v6  ;;  %v474_v12 = vrot.slane %v473_v10, 2 }
 0x264   : > { %v469_v13 = vrot.slane %v468_v11, 1  ;;  %v475_v14 = vadd.f32 %v474_v12, %v473_v10  ;;  %v878_v12 = vld [vmem:[#allocation7 + $0x6] ss:$0 sm:$0xff] }
 0x266   : > { %v470_v15 = vadd.f32 %v469_v13, %v468_v11  ;;  %v476_v16 = vrot.slane %v475_v14, 1 }
 0x268   : > { %v477_v17 = vadd.f32 %v476_v16, %v475_v14  ;;  %v478_v18 = vmul.f32 0.125, %v470_v15 }
 0x26a   : > { %v479_v19 = vmul.f32 0.125, %v477_v17  ;;  %v480_v20 = vmul.f32 %v478_v18, %v478_v18  ;;  %v487_v27 = vsub.f32 %v459_v1, %v478_v18 }
 0x26c   : > { %v481_v21 = vsub.f32 %v479_v19, %v480_v20 }
 0x26e   : > { %v482_v22 = vmax.f32 %v481_v21, 0.0 }
 0x270   : > { %v483_v23 = vadd.f32 1e-05, %v482_v22 }
 0x272   : > { %1103 = vrsqrt.f32 %v483_v23 }
 0x27c   : > { %v1104_v25 = vpop.eup %1103 }
 0x27d   : > { %v486_v26 = vmul.f32 %v1104_v25, %v485_v24 }
 0x27f   : > { %v491_v28 = vrot.slane %v486_v26, %v1441_v46 }
 0x281   : > { %v492_v30 = vmul.f32 %v491_v28, %v487_v27 }
 0x283   : > { %v498_v31 = vadd.f32 %v868_v29, %v492_v30 }
 0x285   : > { %v499_v32 = vmax.f32 %v498_v31, 0.0 }
 0x287   : > { %v500_v33 = vpack.c.bf16 %v499_v32, %v499_v32 }
 0x289   : > { %982 = vmatmul.mubr.bf16.vlgmr.msra.gmra.mrb[4].mxu0 %v500_v33 }
 0x35c   : > { %v600_v42 = vpop.f32.mrb[4].mxu0 }
 0x35d   : > { %v606_v43 = vrot.slane %v600_v42, 4  ;;  %v612_v44 = vmul.f32 %v600_v42, %v600_v42  ;;  %v983_v45 = vpop.f32.mrb[5].mxu0 }
 0x35e   : > { %v603_v47 = vpop.f32.mrb[6].mxu0 }
 0x35f   : > { %v607_v48 = vadd.f32 %v606_v43, %v600_v42  ;;  %v613_v49 = vrot.slane %v612_v44, 4  ;;  %v984_v50 = vpop.f32.mrb[7].mxu0 }
 0x361   : > { %v608_v51 = vrot.slane %v607_v48, 2  ;;  %v614_v52 = vadd.f32 %v613_v49, %v612_v44 }
 0x363   : > { %v609_v53 = vadd.f32 %v608_v51, %v607_v48  ;;  %v615_v54 = vrot.slane %v614_v52, 2 }
 0x365   : > { %v610_v55 = vrot.slane %v609_v53, 1  ;;  %v616_v56 = vadd.f32 %v615_v54, %v614_v52 }
 0x367   : > { %v611_v57 = vadd.f32 %v610_v55, %v609_v53  ;;  %v617_v58 = vrot.slane %v616_v56, 1 }
 0x369   : > { %v618_v59 = vadd.f32 %v617_v58, %v616_v56  ;;  %v619_v60 = vmul.f32 0.125, %v611_v57 }
 0x36b   : > { %v620_v0 = vmul.f32 0.125, %v618_v59  ;;  %v621_v61 = vmul.f32 %v619_v60, %v619_v60  ;;  %v628_v5 = vsub.f32 %v600_v42, %v619_v60 }
 0x36d   : > { %v622_v62 = vsub.f32 %v620_v0, %v621_v61 }
 0x36f   : > { %v623_v63 = vmax.f32 %v622_v62, 0.0 }
 0x371   : > { %v624_v1 = vadd.f32 1e-05, %v623_v63 }
 0x373   : > { %1105 = vrsqrt.f32 %v624_v1 }
 0x37d   : > { %v1106_v3 = vpop.eup %1105 }
 0x37e   : > { %v627_v4 = vmul.f32 %v1106_v3, %v626_v2 }
 0x380   : > { %v632_v6 = vrot.slane %v627_v4, %v1441_v46 }
 0x382   : > { %v633_v8 = vmul.f32 %v632_v6, %v628_v5 }
 0x384   : > { %v639_v9 = vadd.f32 %v877_v7, %v633_v8 }
 0x386   : > { %v640_v10 = vmax.f32 %v639_v9, 0.0 }
 0x388   : > { %v641_v11 = vpack.c.bf16 %v640_v10, %v640_v10 }
 0x38a   : > { %1002 = vmatmul.mubr.bf16.vlgmr.msra.gmra.mrb[4].mxu1 %v641_v11 }
 0x45d   : > { %v746_v13 = vpop.f32.mrb[4].mxu1 }
 0x45e   : > { %v747_v14 = vadd.f32 %v878_v12, %v746_v13  ;;  %v1003_v15 = vpop.f32.mrb[5].mxu1 }
 0x45f   : > { %v749_v16 = vpop.f32.mrb[6].mxu1 }
 0x460   : > { %1107 = vtanh.f32 %v747_v14  ;;  %v1004_v17 = vpop.f32.mrb[7].mxu1 }
 0x46a   : > { %v1108_v46 = vpop.eup %1107 }
 0x46b   : > { %754 = vst.msk [vmem:[%s212_s8] sm:$0xff] %vm753_vm2, %v1108_v46 }
 0x46c PF: > { %p14_p9 = scmp.ge.s32.totalorder %s1355_s27, 6   ;;  %s1495_s12 = smov %s1225_s13 }
 0x46d   : > { %s1496_s13 = smov %s1229_s14  ;;  %s1497_s14 = smov %s1366_s30 }
 0x46e   : > { %s1498_s15 = smov %s1355_s27  ;;  %16 = sbr.rel (!%p14_p9) target bundleno = 4 (0x4), region = 83 }
 0x475   :  { %774 = vsyncpa [#allocation4], 1 }
 0x476   :  { %776 = vsyncpa [#allocation4 + $0x1], 1 }
 0x477   :  { %777 = vsyncpa [#allocation6], 1 }

</bundles_post_ra>
